<compile_context>
chip_gen: v7x
topology: tpu7x:2x2x1
jax: 0.10.0
libtpu: 0.0.40
codegen_flags: <defaults>
</compile_context>

<pallas_src>
import math

import jax
import jax.numpy as jnp
from jax.experimental import pallas as pl
from jax.experimental.pallas import tpu as pltpu


# ---------------------------------------------------------------------------
# In-kernel helpers / kernels
# ---------------------------------------------------------------------------
def _banded_conv(x, b_ref, H):
    """KH lane-dense matmuls of x (M=Nb*H, W*Cin) bf16 with b_ref (KH, W*Cin, W*Cout).

    The W halo is already folded into the banded weight; the H halo is handled
    here by shifting rows within each image and masking rows that would cross
    an image boundary (which also realizes the zero padding at top/bottom).
    Returns the f32 accumulator of shape (M, W*Cout).
    """
    M, WCin = x.shape
    KH, _, WC = b_ref.shape
    pad = (KH - 1) // 2
    row = jax.lax.broadcasted_iota(jnp.int32, (M, 1), 0) % H   # row index inside image
    zero = jnp.zeros((), x.dtype)

    acc = jnp.zeros((M, WC), jnp.float32)
    for kh in range(KH):                       # static, unrolled (3 taps)
        s = kh - pad                           # source-row offset for this tap
        if s == 0:
            xs = x
        elif s < 0:
            xs = jnp.concatenate(
                [jnp.zeros((-s, WCin), x.dtype), x[: M + s]], axis=0)
            xs = jnp.where(row + s >= 0, xs, zero)
        else:
            xs = jnp.concatenate(
                [x[s:], jnp.zeros((s, WCin), x.dtype)], axis=0)
            xs = jnp.where(row + s < H, xs, zero)
        acc = acc + jnp.dot(xs, b_ref[kh], preferred_element_type=jnp.float32)
    return acc


def conv_stats_kernel(x_ref, b_ref, stats_ref):
    """Pass 1: conv (never written to HBM) -> per-lane BN statistic partials.

    x_ref    : (Nb, H, W*Cin)       activation block (unpadded), channels in lanes
    b_ref    : (KH, W*Cin, W*Cout)  bf16 banded conv weight (grid-invariant)
    stats_ref: (1, 2, W*Cout)       f32 [column sums; column sums of squares]
    """
    Nb, H, WCin = x_ref.shape
    x = x_ref[...].astype(jnp.bfloat16).reshape(Nb * H, WCin)
    acc = _banded_conv(x, b_ref, H)
    s1 = jnp.sum(acc, axis=0, keepdims=True)
    s2 = jnp.sum(acc * acc, axis=0, keepdims=True)
    stats_ref[0] = jnp.concatenate([s1, s2], axis=0)          # one (2, WC) store


def conv_bn_relu_kernel(x_ref, b_ref, scale_ref, shift_ref, o_ref):
    """Pass 2: conv recompute + folded per-channel affine + ReLU, lane-dense output."""
    Nb, H, WCin = x_ref.shape
    WC = o_ref.shape[-1]
    x = x_ref[...].astype(jnp.bfloat16).reshape(Nb * H, WCin)
    acc = _banded_conv(x, b_ref, H)
    z = acc * scale_ref[...] + shift_ref[...]                 # (1, WC) broadcast
    o_ref[...] = jnp.maximum(z, 0.0).astype(o_ref.dtype).reshape(Nb, H, WC)


# ---------------------------------------------------------------------------
# Wrapper
# ---------------------------------------------------------------------------
def _build_banded_weight(weight, W, pad):
    """(Cout, Cin, KH, KW) conv weight -> (KH, W*Cin, W*Cout) banded matrices.

    The zero padding along W is folded into the band (out-of-range taps are
    zero), so the kernel consumes the *unpadded* activation rows directly.
    """
    Cout, Cin, KH, KW = weight.shape
    w_hwio = jnp.transpose(weight, (2, 3, 1, 0)).astype(jnp.float32)  # (KH,KW,Cin,Cout)

    col = jnp.arange(W * Cout)
    w_out, c_out = col // Cout, col % Cout
    row = jnp.arange(W * Cin)
    w_in, c_in = row // Cin, row % Cin

    kw = w_in[:, None] - w_out[None, :] + pad            # (W*Cin, W*Cout)
    valid = (kw >= 0) & (kw < KW)
    kw_c = jnp.clip(kw, 0, KW - 1)
    b = w_hwio[:, kw_c, c_in[:, None], c_out[None, :]]   # (KH, W*Cin, W*Cout)
    return jnp.where(valid[None], b, jnp.float32(0.0))


def _pick_batch_block(N, per_image_bytes, *, target_bytes=2 << 20, min_steps=2):
    """Largest divisor of N whose block fits target_bytes while keeping at
    least min_steps grid steps when possible (both v7x TensorCores busy)."""
    best = 1
    for d in range(1, N + 1):
        if N % d:
            continue
        if d * per_image_bytes > target_bytes:
            continue
        if (N // d) >= min_steps or N < min_steps:
            best = d
    return best


def ecblock_forward_nhwc(x_nhwc, weight, gamma, beta, *,
                         kernel_size=3, stride=1, eps=1e-5, out_dtype=None):
    """Channels-last core: x (N,H,W,Cin), weight (Cout,Cin,KH,KW) -> (N,H,W,Cout)."""
    assert stride == 1, "kernel implements the module's default stride=1 path"
    pad = math.ceil((kernel_size - stride) / 2)

    N, H, W, Cin = x_nhwc.shape
    Cout, _, KH, KW = weight.shape
    WC = W * Cout
    if out_dtype is None:
        out_dtype = x_nhwc.dtype

    # Lane-dense activation layout (reshape merges minor dims -> free, no HBM pass).
    x2d = x_nhwc.reshape(N, H, W * Cin)
    b_banded = _build_banded_weight(weight, W, pad).astype(jnp.bfloat16)
    # TODO(synk): W-tile the banded weight (haloed columns) once W*Cin/W*Cout
    # grow past a few hundred lanes; the band is O(W^2) and must stay well
    # under v7x's 64 MiB VMEM, and its mostly-zero K wastes MXU work at large W.

    per_image_bytes = H * WC * 4 + H * W * Cin * x2d.dtype.itemsize
    Nb = _pick_batch_block(N, per_image_bytes)
    steps = N // Nb

    cparams = pltpu.CompilerParams(dimension_semantics=("parallel",))

    # ---- pass 1: conv recompute -> BN statistic partials only --------------
    stats = pl.pallas_call(
        conv_stats_kernel,
        grid=(steps,),
        in_specs=[
            pl.BlockSpec((Nb, H, W * Cin), lambda n: (n, 0, 0)),
            pl.BlockSpec((KH, W * Cin, WC), lambda n: (0, 0, 0)),  # grid-invariant
        ],
        out_specs=pl.BlockSpec((1, 2, WC), lambda n: (n, 0, 0)),
        out_shape=jax.ShapeDtypeStruct((steps, 2, WC), jnp.float32),
        compiler_params=cparams,
    )(x2d, b_banded)

    # ---- global training-mode BN statistics (tiny reduction, plain JAX) ----
    st = stats.sum(axis=0).reshape(2, W, Cout).sum(axis=1)       # (2, Cout)
    count = jnp.float32(N * H * W)
    mean = st[0] / count
    var = jnp.maximum(st[1] / count - mean * mean, 0.0)          # biased var
    inv_std = jax.lax.rsqrt(var + jnp.float32(eps))
    scale = gamma.astype(jnp.float32) * inv_std                  # (Cout,)
    shift = beta.astype(jnp.float32) - mean * scale
    scale_wc = jnp.tile(scale, W).reshape(1, WC)                 # lane layout w*Cout+c
    shift_wc = jnp.tile(shift, W).reshape(1, WC)

    # ---- pass 2: conv recompute + BN affine + ReLU, straight to output -----
    out2d = pl.pallas_call(
        conv_bn_relu_kernel,
        grid=(steps,),
        in_specs=[
            pl.BlockSpec((Nb, H, W * Cin), lambda n: (n, 0, 0)),
            pl.BlockSpec((KH, W * Cin, WC), lambda n: (0, 0, 0)),
            pl.BlockSpec((1, WC), lambda n: (0, 0)),
            pl.BlockSpec((1, WC), lambda n: (0, 0)),
        ],
        out_specs=pl.BlockSpec((Nb, H, WC), lambda n: (n, 0, 0)),
        out_shape=jax.ShapeDtypeStruct((N, H, WC), out_dtype),
        compiler_params=cparams,
    )(x2d, b_banded, scale_wc, shift_wc)

    return out2d.reshape(N, H, W, Cout)


def ecblock_forward(x_nchw, weight, gamma, beta, *, kernel_size=3, stride=1):
    """PyTorch-convention entry point: NCHW in, NCHW out."""
    # TODO(synk): accept/emit NHWC at the model boundary to drop these two
    # lane-hostile full-tensor transposes entirely.  The bf16 cast is fused
    # into the entry transpose so the kernel reads bf16 x from HBM.
    x_nhwc = jnp.transpose(x_nchw, (0, 2, 3, 1)).astype(jnp.bfloat16)
    y_nhwc = ecblock_forward_nhwc(x_nhwc, weight, gamma, beta,
                                  kernel_size=kernel_size, stride=stride,
                                  out_dtype=x_nchw.dtype)
    return jnp.transpose(y_nhwc, (0, 3, 1, 2))


# ---------------------------------------------------------------------------
if __name__ == "__main__":
    key = jax.random.PRNGKey(0)
    k_x, k_w = jax.random.split(key)

    # Small shapes consistent with the module: batch=2, Cin=4, Cout=8, 16x16.
    N, Cin, Cout, H, W = 2, 4, 8, 16, 16
    ksize = 3

    x = jax.random.normal(k_x, (N, Cin, H, W), dtype=jnp.float32)
    fan_in = Cin * ksize * ksize
    bound = 1.0 / math.sqrt(fan_in)
    weight = jax.random.uniform(k_w, (Cout, Cin, ksize, ksize),
                                minval=-bound, maxval=bound, dtype=jnp.float32)
    gamma = jnp.ones((Cout,), jnp.float32)   # BatchNorm2d affine init
    beta = jnp.zeros((Cout,), jnp.float32)

    fwd = jax.jit(lambda a, b, c, d: ecblock_forward(a, b, c, d,
                                                     kernel_size=ksize, stride=1))
    y = jax.block_until_ready(fwd(x, weight, gamma, beta))
    assert y.shape == (N, Cout, H, W)

    # Sanity check against a pure-JAX reference computed on the same
    # bf16-quantized operands the MXU consumes (f32 accumulation everywhere).
    xq = x.astype(jnp.bfloat16).astype(jnp.float32)
    wq = weight.astype(jnp.bfloat16).astype(jnp.float32)
    ref_conv = jax.lax.conv_general_dilated(
        xq, wq, window_strides=(1, 1), padding=((1, 1), (1, 1)),
        dimension_numbers=("NCHW", "OIHW", "NCHW"),
        precision=jax.lax.Precision.HIGHEST)
    mean = ref_conv.mean(axis=(0, 2, 3), keepdims=True)
    var = ref_conv.var(axis=(0, 2, 3), keepdims=True)      # biased (training BN)
    ref = (ref_conv - mean) * jax.lax.rsqrt(var + 1e-5)
    ref = ref * gamma.reshape(1, -1, 1, 1) + beta.reshape(1, -1, 1, 1)
    ref = jnp.maximum(ref, 0.0)

    max_err = float(jnp.max(jnp.abs(y - ref)))
    assert max_err < 1e-2, f"max abs error too large: {max_err}"
    print("KERNEL_OK")
</pallas_src>

<mosaic_0001>
module attributes {stable_mosaic.version = 11 : i64} {
  func.func @conv_stats_kernel(%arg0: i32, %arg1: memref<1x16x64xbf16, #tpu.memory_space<vmem>>, %arg2: memref<3x64x128xbf16, #tpu.memory_space<vmem>>, %arg3: memref<1x2x128xf32, #tpu.memory_space<vmem>>) attributes {dimension_semantics = [#tpu.dimension_semantics<parallel>], iteration_bounds = array<i64: 2>, scalar_prefetch = 0 : i64, scratch_operands = 0 : i64, tpu.core_type = #tpu.core_type<tc>, window_params = [{transform_indices = @transform_0, window_bounds = array<i64: 1, 16, 64>}, {pipeline_mode = #tpu.pipeline_mode<synchronous>, transform_indices = @transform_1, window_bounds = array<i64: 3, 64, 128>}, {transform_indices = @transform_2, window_bounds = array<i64: 1, 2, 128>}]} {
    %c0 = arith.constant 0 : index
    %c0_0 = arith.constant 0 : index
    %c0_1 = arith.constant 0 : index
    %0 = vector.load %arg1[%c0, %c0_0, %c0_1] : memref<1x16x64xbf16, #tpu.memory_space<vmem>>, vector<1x16x64xbf16>
    %1 = vector.shape_cast %0 : vector<1x16x64xbf16> to vector<16x64xbf16>
    %2 = tpu.iota {dimensions = array<i32: 0>} : vector<16x1xi32>
    %c16_i32 = arith.constant 16 : i32
    %c0_i32 = arith.constant 0 : i32
    %3 = arith.cmpi eq, %c16_i32, %c0_i32 : i32
    %c1_i32 = arith.constant 1 : i32
    %4 = arith.select %3, %c1_i32, %c16_i32 : i32
    %5 = vector.broadcast %4 : i32 to vector<16x1xi32>
    %6 = arith.remsi %2, %5 : vector<16x1xi32>
    %c0_i32_2 = arith.constant 0 : i32
    %7 = vector.broadcast %c0_i32_2 : i32 to vector<16x1xi32>
    %8 = arith.cmpi ne, %6, %7 : vector<16x1xi32>
    %c0_i32_3 = arith.constant 0 : i32
    %9 = vector.broadcast %c0_i32_3 : i32 to vector<16x1xi32>
    %10 = arith.cmpi slt, %6, %9 : vector<16x1xi32>
    %c0_i32_4 = arith.constant 0 : i32
    %11 = arith.cmpi slt, %4, %c0_i32_4 : i32
    %12 = vector.broadcast %11 : i1 to vector<16x1xi1>
    %13 = vector.broadcast %12 : vector<16x1xi1> to vector<16x1xi1>
    %14 = arith.xori %10, %13 : vector<16x1xi1>
    %15 = arith.andi %14, %8 : vector<16x1xi1>
    %16 = vector.broadcast %4 : i32 to vector<16x1xi32>
    %17 = arith.addi %6, %16 : vector<16x1xi32>
    %18 = arith.select %15, %17, %6 : vector<16x1xi1>, vector<16x1xi32>
    %cst = arith.constant 0.000000e+00 : f32
    %19 = vector.broadcast %cst : f32 to vector<16x128xf32>
    %cst_5 = arith.constant 0.000000e+00 : bf16
    %20 = vector.broadcast %cst_5 : bf16 to vector<1x64xbf16>
    %21 = vector.extract_strided_slice %1 {offsets = [0, 0], sizes = [15, 64], strides = [1, 1]} : vector<16x64xbf16> to vector<15x64xbf16>
    %22 = tpu.concatenate %20, %21 in 0 : vector<1x64xbf16>, vector<15x64xbf16> -> vector<16x64xbf16>
    %c-1_i32 = arith.constant -1 : i32
    %23 = vector.broadcast %c-1_i32 : i32 to vector<16x1xi32>
    %24 = arith.addi %18, %23 : vector<16x1xi32>
    %c0_i32_6 = arith.constant 0 : i32
    %25 = vector.broadcast %c0_i32_6 : i32 to vector<16x1xi32>
    %26 = arith.cmpi sge, %24, %25 : vector<16x1xi32>
    %cst_7 = arith.constant 0.000000e+00 : bf16
    %27 = vector.shape_cast %26 : vector<16x1xi1> to vector<16x1xi1>
    %28 = vector.broadcast %27 : vector<16x1xi1> to vector<16x64xi1>
    %29 = vector.broadcast %cst_7 : bf16 to vector<16x64xbf16>
    %30 = arith.select %28, %22, %29 : vector<16x64xi1>, vector<16x64xbf16>
    %c0_8 = arith.constant 0 : index
    %c0_9 = arith.constant 0 : index
    %c0_10 = arith.constant 0 : index
    %31 = vector.load %arg2[%c0_8, %c0_9, %c0_10] : memref<3x64x128xbf16, #tpu.memory_space<vmem>>, vector<1x64x128xbf16>
    %32 = vector.shape_cast %31 : vector<1x64x128xbf16> to vector<64x128xbf16>
    %cst_11 = arith.constant dense<0.000000e+00> : vector<16x128xf32>
    %33 = tpu.matmul %30, %32, %cst_11 {dimension_numbers = #tpu.dot_dimension_numbers<[1], [0], [0], [1], [0, 0, 1, 1], [], []>} : vector<16x64xbf16>, vector<64x128xbf16>, vector<16x128xf32> -> vector<16x128xf32>
    %34 = arith.addf %19, %33 : vector<16x128xf32>
    %c1 = arith.constant 1 : index
    %c0_12 = arith.constant 0 : index
    %c0_13 = arith.constant 0 : index
    %35 = vector.load %arg2[%c1, %c0_12, %c0_13] : memref<3x64x128xbf16, #tpu.memory_space<vmem>>, vector<1x64x128xbf16>
    %36 = vector.shape_cast %35 : vector<1x64x128xbf16> to vector<64x128xbf16>
    %cst_14 = arith.constant dense<0.000000e+00> : vector<16x128xf32>
    %37 = tpu.matmul %1, %36, %cst_14 {dimension_numbers = #tpu.dot_dimension_numbers<[1], [0], [0], [1], [0, 0, 1, 1], [], []>} : vector<16x64xbf16>, vector<64x128xbf16>, vector<16x128xf32> -> vector<16x128xf32>
    %38 = arith.addf %34, %37 : vector<16x128xf32>
    %39 = vector.extract_strided_slice %1 {offsets = [1, 0], sizes = [15, 64], strides = [1, 1]} : vector<16x64xbf16> to vector<15x64xbf16>
    %cst_15 = arith.constant 0.000000e+00 : bf16
    %40 = vector.broadcast %cst_15 : bf16 to vector<1x64xbf16>
    %41 = tpu.concatenate %39, %40 in 0 : vector<15x64xbf16>, vector<1x64xbf16> -> vector<16x64xbf16>
    %c1_i32_16 = arith.constant 1 : i32
    %42 = vector.broadcast %c1_i32_16 : i32 to vector<16x1xi32>
    %43 = arith.addi %18, %42 : vector<16x1xi32>
    %c16_i32_17 = arith.constant 16 : i32
    %44 = vector.broadcast %c16_i32_17 : i32 to vector<16x1xi32>
    %45 = arith.cmpi slt, %43, %44 : vector<16x1xi32>
    %cst_18 = arith.constant 0.000000e+00 : bf16
    %46 = vector.shape_cast %45 : vector<16x1xi1> to vector<16x1xi1>
    %47 = vector.broadcast %46 : vector<16x1xi1> to vector<16x64xi1>
    %48 = vector.broadcast %cst_18 : bf16 to vector<16x64xbf16>
    %49 = arith.select %47, %41, %48 : vector<16x64xi1>, vector<16x64xbf16>
    %c2 = arith.constant 2 : index
    %c0_19 = arith.constant 0 : index
    %c0_20 = arith.constant 0 : index
    %50 = vector.load %arg2[%c2, %c0_19, %c0_20] : memref<3x64x128xbf16, #tpu.memory_space<vmem>>, vector<1x64x128xbf16>
    %51 = vector.shape_cast %50 : vector<1x64x128xbf16> to vector<64x128xbf16>
    %cst_21 = arith.constant dense<0.000000e+00> : vector<16x128xf32>
    %52 = tpu.matmul %49, %51, %cst_21 {dimension_numbers = #tpu.dot_dimension_numbers<[1], [0], [0], [1], [0, 0, 1, 1], [], []>} : vector<16x64xbf16>, vector<64x128xbf16>, vector<16x128xf32> -> vector<16x128xf32>
    %53 = arith.addf %38, %52 : vector<16x128xf32>
    %cst_22 = arith.constant dense<0.000000e+00> : vector<128xf32>
    %54 = vector.multi_reduction <add>, %53, %cst_22 [0] : vector<16x128xf32> to vector<128xf32>
    %55 = vector.shape_cast %54 : vector<128xf32> to vector<1x128xf32>
    %56 = arith.mulf %53, %53 : vector<16x128xf32>
    %cst_23 = arith.constant dense<0.000000e+00> : vector<128xf32>
    %57 = vector.multi_reduction <add>, %56, %cst_23 [0] : vector<16x128xf32> to vector<128xf32>
    %58 = vector.shape_cast %57 : vector<128xf32> to vector<1x128xf32>
    %59 = tpu.concatenate %55, %58 in 0 : vector<1x128xf32>, vector<1x128xf32> -> vector<2x128xf32>
    %c0_24 = arith.constant 0 : index
    %c0_25 = arith.constant 0 : index
    %c0_26 = arith.constant 0 : index
    %60 = vector.load %arg3[%c0_24, %c0_25, %c0_26] : memref<1x2x128xf32, #tpu.memory_space<vmem>>, vector<1x2x128xf32>
    %61 = vector.shape_cast %60 : vector<1x2x128xf32> to vector<2x128xf32>
    %62 = vector.shape_cast %59 : vector<2x128xf32> to vector<1x2x128xf32>
    tpu.vector_store %arg3[%c0_24, %c0_25, %c0_26], %62 {strides = array<i32>} : memref<1x2x128xf32, #tpu.memory_space<vmem>>, vector<1x2x128xf32>,
    return
  }
  func.func @transform_0(%arg0: i32) -> (i32, i32, i32) {
    %c0_i32 = arith.constant 0 : i32
    %c0_i32_0 = arith.constant 0 : i32
    %c0_i32_1 = arith.constant 0 : i32
    return %arg0, %c0_i32, %c0_i32_0 : i32, i32, i32
  }
  func.func @transform_1(%arg0: i32) -> (i32, i32, i32) {
    %c0_i32 = arith.constant 0 : i32
    %c0_i32_0 = arith.constant 0 : i32
    %c0_i32_1 = arith.constant 0 : i32
    %c0_i32_2 = arith.constant 0 : i32
    return %c0_i32, %c0_i32_0, %c0_i32_1 : i32, i32, i32
  }
  func.func @transform_2(%arg0: i32) -> (i32, i32, i32) {
    %c0_i32 = arith.constant 0 : i32
    %c0_i32_0 = arith.constant 0 : i32
    %c0_i32_1 = arith.constant 0 : i32
    return %arg0, %c0_i32, %c0_i32_0 : i32, i32, i32
  }
}

module attributes {stable_mosaic.version = 11 : i64} {
  func.func @conv_bn_relu_kernel(%arg0: i32, %arg1: memref<1x16x64xbf16, #tpu.memory_space<vmem>>, %arg2: memref<3x64x128xbf16, #tpu.memory_space<vmem>>, %arg3: memref<1x128xf32, #tpu.memory_space<vmem>>, %arg4: memref<1x128xf32, #tpu.memory_space<vmem>>, %arg5: memref<1x16x128xf32, #tpu.memory_space<vmem>>) attributes {dimension_semantics = [#tpu.dimension_semantics<parallel>], iteration_bounds = array<i64: 2>, scalar_prefetch = 0 : i64, scratch_operands = 0 : i64, tpu.core_type = #tpu.core_type<tc>, window_params = [{transform_indices = @transform_0, window_bounds = array<i64: 1, 16, 64>}, {pipeline_mode = #tpu.pipeline_mode<synchronous>, transform_indices = @transform_1, window_bounds = array<i64: 3, 64, 128>}, {pipeline_mode = #tpu.pipeline_mode<synchronous>, transform_indices = @transform_2, window_bounds = array<i64: 1, 128>}, {pipeline_mode = #tpu.pipeline_mode<synchronous>, transform_indices = @transform_3, window_bounds = array<i64: 1, 128>}, {transform_indices = @transform_4, window_bounds = array<i64: 1, 16, 128>}]} {
    %c0 = arith.constant 0 : index
    %c0_0 = arith.constant 0 : index
    %c0_1 = arith.constant 0 : index
    %0 = vector.load %arg1[%c0, %c0_0, %c0_1] : memref<1x16x64xbf16, #tpu.memory_space<vmem>>, vector<1x16x64xbf16>
    %1 = vector.shape_cast %0 : vector<1x16x64xbf16> to vector<16x64xbf16>
    %2 = tpu.iota {dimensions = array<i32: 0>} : vector<16x1xi32>
    %c16_i32 = arith.constant 16 : i32
    %c0_i32 = arith.constant 0 : i32
    %3 = arith.cmpi eq, %c16_i32, %c0_i32 : i32
    %c1_i32 = arith.constant 1 : i32
    %4 = arith.select %3, %c1_i32, %c16_i32 : i32
    %5 = vector.broadcast %4 : i32 to vector<16x1xi32>
    %6 = arith.remsi %2, %5 : vector<16x1xi32>
    %c0_i32_2 = arith.constant 0 : i32
    %7 = vector.broadcast %c0_i32_2 : i32 to vector<16x1xi32>
    %8 = arith.cmpi ne, %6, %7 : vector<16x1xi32>
    %c0_i32_3 = arith.constant 0 : i32
    %9 = vector.broadcast %c0_i32_3 : i32 to vector<16x1xi32>
    %10 = arith.cmpi slt, %6, %9 : vector<16x1xi32>
    %c0_i32_4 = arith.constant 0 : i32
    %11 = arith.cmpi slt, %4, %c0_i32_4 : i32
    %12 = vector.broadcast %11 : i1 to vector<16x1xi1>
    %13 = vector.broadcast %12 : vector<16x1xi1> to vector<16x1xi1>
    %14 = arith.xori %10, %13 : vector<16x1xi1>
    %15 = arith.andi %14, %8 : vector<16x1xi1>
    %16 = vector.broadcast %4 : i32 to vector<16x1xi32>
    %17 = arith.addi %6, %16 : vector<16x1xi32>
    %18 = arith.select %15, %17, %6 : vector<16x1xi1>, vector<16x1xi32>
    %cst = arith.constant 0.000000e+00 : f32
    %19 = vector.broadcast %cst : f32 to vector<16x128xf32>
    %cst_5 = arith.constant 0.000000e+00 : bf16
    %20 = vector.broadcast %cst_5 : bf16 to vector<1x64xbf16>
    %21 = vector.extract_strided_slice %1 {offsets = [0, 0], sizes = [15, 64], strides = [1, 1]} : vector<16x64xbf16> to vector<15x64xbf16>
    %22 = tpu.concatenate %20, %21 in 0 : vector<1x64xbf16>, vector<15x64xbf16> -> vector<16x64xbf16>
    %c-1_i32 = arith.constant -1 : i32
    %23 = vector.broadcast %c-1_i32 : i32 to vector<16x1xi32>
    %24 = arith.addi %18, %23 : vector<16x1xi32>
    %c0_i32_6 = arith.constant 0 : i32
    %25 = vector.broadcast %c0_i32_6 : i32 to vector<16x1xi32>
    %26 = arith.cmpi sge, %24, %25 : vector<16x1xi32>
    %cst_7 = arith.constant 0.000000e+00 : bf16
    %27 = vector.shape_cast %26 : vector<16x1xi1> to vector<16x1xi1>
    %28 = vector.broadcast %27 : vector<16x1xi1> to vector<16x64xi1>
    %29 = vector.broadcast %cst_7 : bf16 to vector<16x64xbf16>
    %30 = arith.select %28, %22, %29 : vector<16x64xi1>, vector<16x64xbf16>
    %c0_8 = arith.constant 0 : index
    %c0_9 = arith.constant 0 : index
    %c0_10 = arith.constant 0 : index
    %31 = vector.load %arg2[%c0_8, %c0_9, %c0_10] : memref<3x64x128xbf16, #tpu.memory_space<vmem>>, vector<1x64x128xbf16>
    %32 = vector.shape_cast %31 : vector<1x64x128xbf16> to vector<64x128xbf16>
    %cst_11 = arith.constant dense<0.000000e+00> : vector<16x128xf32>
    %33 = tpu.matmul %30, %32, %cst_11 {dimension_numbers = #tpu.dot_dimension_numbers<[1], [0], [0], [1], [0, 0, 1, 1], [], []>} : vector<16x64xbf16>, vector<64x128xbf16>, vector<16x128xf32> -> vector<16x128xf32>
    %34 = arith.addf %19, %33 : vector<16x128xf32>
    %c1 = arith.constant 1 : index
    %c0_12 = arith.constant 0 : index
    %c0_13 = arith.constant 0 : index
    %35 = vector.load %arg2[%c1, %c0_12, %c0_13] : memref<3x64x128xbf16, #tpu.memory_space<vmem>>, vector<1x64x128xbf16>
    %36 = vector.shape_cast %35 : vector<1x64x128xbf16> to vector<64x128xbf16>
    %cst_14 = arith.constant dense<0.000000e+00> : vector<16x128xf32>
    %37 = tpu.matmul %1, %36, %cst_14 {dimension_numbers = #tpu.dot_dimension_numbers<[1], [0], [0], [1], [0, 0, 1, 1], [], []>} : vector<16x64xbf16>, vector<64x128xbf16>, vector<16x128xf32> -> vector<16x128xf32>
    %38 = arith.addf %34, %37 : vector<16x128xf32>
    %39 = vector.extract_strided_slice %1 {offsets = [1, 0], sizes = [15, 64], strides = [1, 1]} : vector<16x64xbf16> to vector<15x64xbf16>
    %cst_15 = arith.constant 0.000000e+00 : bf16
    %40 = vector.broadcast %cst_15 : bf16 to vector<1x64xbf16>
    %41 = tpu.concatenate %39, %40 in 0 : vector<15x64xbf16>, vector<1x64xbf16> -> vector<16x64xbf16>
    %c1_i32_16 = arith.constant 1 : i32
    %42 = vector.broadcast %c1_i32_16 : i32 to vector<16x1xi32>
    %43 = arith.addi %18, %42 : vector<16x1xi32>
    %c16_i32_17 = arith.constant 16 : i32
    %44 = vector.broadcast %c16_i32_17 : i32 to vector<16x1xi32>
    %45 = arith.cmpi slt, %43, %44 : vector<16x1xi32>
    %cst_18 = arith.constant 0.000000e+00 : bf16
    %46 = vector.shape_cast %45 : vector<16x1xi1> to vector<16x1xi1>
    %47 = vector.broadcast %46 : vector<16x1xi1> to vector<16x64xi1>
    %48 = vector.broadcast %cst_18 : bf16 to vector<16x64xbf16>
    %49 = arith.select %47, %41, %48 : vector<16x64xi1>, vector<16x64xbf16>
    %c2 = arith.constant 2 : index
    %c0_19 = arith.constant 0 : index
    %c0_20 = arith.constant 0 : index
    %50 = vector.load %arg2[%c2, %c0_19, %c0_20] : memref<3x64x128xbf16, #tpu.memory_space<vmem>>, vector<1x64x128xbf16>
    %51 = vector.shape_cast %50 : vector<1x64x128xbf16> to vector<64x128xbf16>
    %cst_21 = arith.constant dense<0.000000e+00> : vector<16x128xf32>
    %52 = tpu.matmul %49, %51, %cst_21 {dimension_numbers = #tpu.dot_dimension_numbers<[1], [0], [0], [1], [0, 0, 1, 1], [], []>} : vector<16x64xbf16>, vector<64x128xbf16>, vector<16x128xf32> -> vector<16x128xf32>
    %53 = arith.addf %38, %52 : vector<16x128xf32>
    %c0_22 = arith.constant 0 : index
    %c0_23 = arith.constant 0 : index
    %54 = vector.load %arg3[%c0_22, %c0_23] : memref<1x128xf32, #tpu.memory_space<vmem>>, vector<1x128xf32>
    %55 = vector.broadcast %54 : vector<1x128xf32> to vector<16x128xf32>
    %56 = arith.mulf %53, %55 : vector<16x128xf32>
    %c0_24 = arith.constant 0 : index
    %c0_25 = arith.constant 0 : index
    %57 = vector.load %arg4[%c0_24, %c0_25] : memref<1x128xf32, #tpu.memory_space<vmem>>, vector<1x128xf32>
    %58 = vector.broadcast %57 : vector<1x128xf32> to vector<16x128xf32>
    %59 = arith.addf %56, %58 : vector<16x128xf32>
    %cst_26 = arith.constant 0.000000e+00 : f32
    %60 = vector.broadcast %cst_26 : f32 to vector<16x128xf32>
    %61 = arith.maximumf %59, %60 : vector<16x128xf32>
    %62 = vector.shape_cast %61 : vector<16x128xf32> to vector<1x16x128xf32>
    %c0_27 = arith.constant 0 : index
    %c0_28 = arith.constant 0 : index
    %c0_29 = arith.constant 0 : index
    %63 = vector.load %arg5[%c0_27, %c0_28, %c0_29] : memref<1x16x128xf32, #tpu.memory_space<vmem>>, vector<1x16x128xf32>
    tpu.vector_store %arg5[%c0_27, %c0_28, %c0_29], %62 {strides = array<i32>} : memref<1x16x128xf32, #tpu.memory_space<vmem>>, vector<1x16x128xf32>,
    return
  }
  func.func @transform_0(%arg0: i32) -> (i32, i32, i32) {
    %c0_i32 = arith.constant 0 : i32
    %c0_i32_0 = arith.constant 0 : i32
    %c0_i32_1 = arith.constant 0 : i32
    return %arg0, %c0_i32, %c0_i32_0 : i32, i32, i32
  }
  func.func @transform_1(%arg0: i32) -> (i32, i32, i32) {
    %c0_i32 = arith.constant 0 : i32
    %c0_i32_0 = arith.constant 0 : i32
    %c0_i32_1 = arith.constant 0 : i32
    %c0_i32_2 = arith.constant 0 : i32
    return %c0_i32, %c0_i32_0, %c0_i32_1 : i32, i32, i32
  }
  func.func @transform_2(%arg0: i32) -> (i32, i32) {
    %c0_i32 = arith.constant 0 : i32
    %c0_i32_0 = arith.constant 0 : i32
    %c0_i32_1 = arith.constant 0 : i32
    return %c0_i32, %c0_i32_0 : i32, i32
  }
  func.func @transform_3(%arg0: i32) -> (i32, i32) {
    %c0_i32 = arith.constant 0 : i32
    %c0_i32_0 = arith.constant 0 : i32
    %c0_i32_1 = arith.constant 0 : i32
    return %c0_i32, %c0_i32_0 : i32, i32
  }
  func.func @transform_4(%arg0: i32) -> (i32, i32, i32) {
    %c0_i32 = arith.constant 0 : i32
    %c0_i32_0 = arith.constant 0 : i32
    %c0_i32_1 = arith.constant 0 : i32
    return %arg0, %c0_i32, %c0_i32_0 : i32, i32, i32
  }
}

</mosaic_0001>

<bundles_post_ra>
// kernel: tile.13
= control target key start
LH: loop header
LB: loop body
LE: loop exit
PB: predicated region body
PF: predicated region fallthrough
CT: control target
= control target key end

     0   :  { %s28_s0 = inlined_call_operand.vmem [shape: f32[8], index: 0, kind: input, shape index: {}]   ;;  %s29_s1 = inlined_call_operand.vmem [shape: f32[16,8], index: 1, kind: output, shape index: {}]  }
   0x1   :  { %v4_v0 = vld [vmem:[%s28_s0] ss:$0 sm:$0xff] }
   0x2   :  { %5 = vst [vmem:[%s29_s1] sm:$0xff] %v4_v0  ;;  %8 = vst [vmem:[%s29_s1 + $0x8] sm:$0xff] %v4_v0 }

// kernel: tile.14
= control target key start
LH: loop header
LB: loop body
LE: loop exit
PB: predicated region body
PF: predicated region fallthrough
CT: control target
= control target key end

     0   :  { %s131_s10 = smov 120   ;;  %s132_s11 = smov 104   ;;  %vm3_vm0 = vcmask 64512   ;;  %vm9_vm1 = vcmask 1048512   ;;  %vm15_vm2 = vcmask 982912   ;;  %vm21_vm3 = vcmask 917312   ;;  %s207_s0 = inlined_call_operand.vmem [shape: f32[16,8], index: 0, kind: input, shape index: {}]   ;;  %s208_s1 = inlined_call_operand.vmem [shape: f32[1,128], index: 1, kind: output, shape index: {}]  }
   0x1   :  { %v101_v0 = vld [vmem:[%s207_s0 + $0xf] sm:$0x1]   ;;  %v103_v1 = vld [vmem:[%s207_s0 + $0xd] sm:$0x1]   ;;  %v102_v2 = vld [vmem:[%s207_s0 + $0xe] sm:$0x1]  }
   0x2   :  { %7 = vrot.lane.b32.xlu0 %v101_v0, %s131_s10  ;;  %19 = vrot.lane.b32.xlu1 %v103_v1, %s132_s11  ;;  %v104_v3 = vld [vmem:[%s207_s0 + $0xc] sm:$0x1]   ;;  %s133_s16 = smov 112   ;;  %s134_s17 = smov 96   ;;  %v105_v4 = vld [vmem:[%s207_s0 + $0xb] sm:$0x1]  }
   0x3   :  { %v106_v5 = vld [vmem:[%s207_s0 + $0xa] sm:$0x1]   ;;  %v2_v6 = vld [vmem:[%s207_s0] sm:$0x1]   ;;  %s135_s24 = smov 88   ;;  %s136_s25 = smov 80  }
   0x4   :  { %4 = vst.msk [vmem:[#allocation0] sm:$0x1] %vm3_vm0, %v2_v6   ;;  %v107_v7 = vld [vmem:[%s207_s0 + $0x9] sm:$0x1]   ;;  %v108_v8 = vld [vmem:[%s207_s0 + $0x8] sm:$0x1]  }
   0x5   :  { %s137_s30 = smov 72   ;;  %s138_s2 = smov 64   ;;  %v109_v9 = vld [vmem:[%s207_s0 + $0x7] sm:$0x1]   ;;  %v110_v10 = vld [vmem:[%s207_s0 + $0x6] sm:$0x1]  }
   0x6   :  { %13 = vrot.lane.b32.xlu0 %v102_v2, %s133_s16  ;;  %25 = vrot.lane.b32.xlu1 %v104_v3, %s134_s17  ;;  %s139_s7 = smov 56   ;;  %s140_s8 = smov 48   ;;  %v111_v11 = vld [vmem:[%s207_s0 + $0x5] sm:$0x1]   ;;  %v112_v12 = vld [vmem:[%s207_s0 + $0x4] sm:$0x1]  }
   0x7   :  { %s141_s13 = smov 40   ;;  %s142_s14 = smov 32   ;;  %v113_v13 = vld [vmem:[%s207_s0 + $0x3] sm:$0x1]   ;;  %v114_v14 = vld [vmem:[%s207_s0 + $0x2] sm:$0x1]  }
   0x8   :  { %s143_s19 = smov 24   ;;  %s144_s20 = smov 16   ;;  %v115_v15 = vld [vmem:[%s207_s0 + $0x1] sm:$0x1]   ;;  %vm27_vm4 = vcmask 851712   ;;  %vm33_vm5 = vcmask 786112  }
   0x9   :  { %s145_s0 = smov 8   ;;  %vm39_vm6 = vcmask 720512   ;;  %vm45_vm7 = vcmask 654912   ;;  %vm51_vm8 = vcmask 589312   ;;  %vm57_vm9 = vcmask 523712  }
   0xa   :  { %31 = vrot.lane.b32.xlu0 %v105_v4, %s135_s24  ;;  %37 = vrot.lane.b32.xlu1 %v106_v5, %s136_s25  ;;  %vm63_vm10 = vcmask 458112   ;;  %vm69_vm11 = vcmask 392512   ;;  %vm75_vm12 = vcmask 326912   ;;  %vm81_vm13 = vcmask 261312  }
   0xb   :  { %vm87_vm14 = vcmask 195712   ;;  %vm93_vm15 = vcmask 130112  }
   0xe   :  { %43 = vrot.lane.b32.xlu0 %v107_v7, %s137_s30  ;;  %49 = vrot.lane.b32.xlu1 %v108_v8, %s138_s2 }
  0x12   :  { %55 = vrot.lane.b32.xlu0 %v109_v9, %s139_s7  ;;  %61 = vrot.lane.b32.xlu1 %v110_v10, %s140_s8 }
  0x16   :  { %67 = vrot.lane.b32.xlu0 %v111_v11, %s141_s13  ;;  %73 = vrot.lane.b32.xlu1 %v112_v12, %s142_s14 }
  0x1a   :  { %79 = vrot.lane.b32.xlu0 %v113_v13, %s143_s19  ;;  %85 = vrot.lane.b32.xlu1 %v114_v14, %s144_s20 }
  0x1e   :  { %91 = vrot.lane.b32.xlu0 %v115_v15, %s145_s0 }
  0x74   :  { %v8_v16 = vpop.permute.xlu0 %7   ;;  %v20_v17 = vpop.permute.xlu1 %19  }
  0x75   :  { %10 = vst.msk [vmem:[#allocation0] sm:$0x1] %vm9_vm1, %v8_v16  }
  0x78   :  { %v14_v18 = vpop.permute.xlu0 %13   ;;  %v26_v19 = vpop.permute.xlu1 %25  }
  0x79   :  { %16 = vst.msk [vmem:[#allocation0] sm:$0x1] %vm15_vm2, %v14_v18  }
  0x7a   :  { %22 = vst.msk [vmem:[#allocation0] sm:$0x1] %vm21_vm3, %v20_v17  }
  0x7b   :  { %28 = vst.msk [vmem:[#allocation0] sm:$0x1] %vm27_vm4, %v26_v19  }
  0x7c   :  { %v32_v20 = vpop.permute.xlu0 %31   ;;  %v38_v21 = vpop.permute.xlu1 %37  }
  0x7d   :  { %34 = vst.msk [vmem:[#allocation0] sm:$0x1] %vm33_vm5, %v32_v20  }
  0x7e   :  { %40 = vst.msk [vmem:[#allocation0] sm:$0x1] %vm39_vm6, %v38_v21  }
  0x80   :  { %v44_v22 = vpop.permute.xlu0 %43   ;;  %v50_v23 = vpop.permute.xlu1 %49  }
  0x81   :  { %46 = vst.msk [vmem:[#allocation0] sm:$0x1] %vm45_vm7, %v44_v22  }
  0x82   :  { %52 = vst.msk [vmem:[#allocation0] sm:$0x1] %vm51_vm8, %v50_v23  }
  0x84   :  { %v56_v24 = vpop.permute.xlu0 %55   ;;  %v62_v25 = vpop.permute.xlu1 %61  }
  0x85   :  { %58 = vst.msk [vmem:[#allocation0] sm:$0x1] %vm57_vm9, %v56_v24  }
  0x86   :  { %64 = vst.msk [vmem:[#allocation0] sm:$0x1] %vm63_vm10, %v62_v25  }
  0x88   :  { %v68_v26 = vpop.permute.xlu0 %67   ;;  %v74_v27 = vpop.permute.xlu1 %73  }
  0x89   :  { %70 = vst.msk [vmem:[#allocation0] sm:$0x1] %vm69_vm11, %v68_v26  }
  0x8a   :  { %76 = vst.msk [vmem:[#allocation0] sm:$0x1] %vm75_vm12, %v74_v27  }
  0x8c   :  { %v80_v28 = vpop.permute.xlu0 %79   ;;  %v86_v29 = vpop.permute.xlu1 %85  }
  0x8d   :  { %82 = vst.msk [vmem:[#allocation0] sm:$0x1] %vm81_vm13, %v80_v28  }
  0x8e   :  { %88 = vst.msk [vmem:[#allocation0] sm:$0x1] %vm87_vm14, %v86_v29  }
  0x90   :  { %v92_v30 = vpop.permute.xlu0 %91  }
  0x91   :  { %94 = vst.msk [vmem:[#allocation0] sm:$0x1] %vm93_vm15, %v92_v30  }
  0x98   :  { %v98_v31 = vld [vmem:[#allocation0] sm:$0x1] }
  0x99   :  { %100 = vst [vmem:[%s208_s1] sm:$0x1] %v98_v31 }

// kernel: _lambda_.2
= control target key start
LH: loop header
LB: loop body
LE: loop exit
PB: predicated region body
PF: predicated region fallthrough
CT: control target
= control target key end

     0   :  { %s690_s9 = smov 0   ;;  %s771_s0 = inlined_call_operand.vmem [shape: bf16[2,16,64], index: 0, kind: input, shape index: {}]   ;;  %s772_s1 = inlined_call_operand.vmem [shape: bf16[3,64,128], index: 1, kind: input, shape index: {}]   ;;  %s773_s2 = inlined_call_operand.vmem [shape: f32[2,2,128], index: 2, kind: output, shape index: {}]  }
   0x1 LB: > { %s536_s10 = sadd.s32 4294967295, %s669_s9   ;;  %p540_p0 = scmp.ge.s32.totalorder %s669_s9, 1  ;;  %s669_s9 = sphi %s690_s9, %s12_s9  }
   0x2   : > { %p112_p1 = scmp.lt.s32.totalorder %s669_s9, 3 }
   0x4   : > { %p113_p2 = pnand %p540_p0, %p112_p1 }
   0x5   : > { %v650_v0 = vld [vmem:[%s772_s1] sm:$0xff] (!%p113_p2)   ;;  %v147_v1 = vlaneseq (!%p113_p2)  ;;  %v671_v2 = vmov (!%p113_p2), 0.0   ;;  %v651_v3 = vld [vmem:[%s772_s1 + $0x8] sm:$0xff] (!%p113_p2)   ;;  %vm672_vm0 = vmmov (!%p113_p2), 0   ;;  %p133_p3 = scmp.lt.s32.totalorder (!%p113_p2), %s536_s10, 1  ;;  %v652_v8 = vld [vmem:[%s772_s1 + $0x10] sm:$0xff] (!%p113_p2)  }
   0x6   : > { %116 = sbr.rel (%p113_p2) target bundleno = 275 (0x113), region = 28  ;;  %608 = vmatprep.subr.bf16.mxu0 (!%p113_p2), %v671_v2  ;;  %596 = vmatprep.subr.bf16.mxu1 (!%p113_p2), %v671_v2  ;;  %v654_v5 = vld [vmem:[%s772_s1 + $0x20] sm:$0xff] (!%p113_p2)   ;;  %vm188_vm1 = vsmask.f32 (!%p113_p2), 256  ;;  %vm673_vm2 = vmmov (!%p113_p2), 1   ;;  %v653_v11 = vld [vmem:[%s772_s1 + $0x18] sm:$0xff] (!%p113_p2)  }
   0x7   : > { %609 = vmatpush3.bf16.msra.mxu0 (!%p113_p2), %v650_v0  ;;  %616 = vmatprep.mubr.msk.bf16.mxu0 (!%p113_p2), %vm672_vm0, %v671_v2  ;;  %v148_v4 = vshrl.u32 (!%p113_p2), %v147_v1, 7  ;;  %vm200_vm3 = vmpackc.low (!%p113_p2), %vm673_vm2, %vm673_vm2  ;;  %vm187_vm4 = vcmask (!%p113_p2), 1040384   ;;  %v674_v13 = vmov (!%p113_p2), 0   ;;  %v657_v15 = vld [vmem:[%s772_s1 + $0x28] sm:$0xff] (!%p113_p2)   ;;  %v659_v22 = vld [vmem:[%s772_s1 + $0x30] sm:$0xff] (!%p113_p2)   ;;  %vm249_vm9 = vcmask (!%p113_p2), 523264  }
   0x8   : > { %610 = vmatprep.subr.bf16.mxu0 (!%p113_p2), %v671_v2  ;;  %604 = vmatprep.mubr.msk.bf16.mxu1 (!%p113_p2), %vm672_vm0, %v671_v2  ;;  %v202_v14 = vsel (!%p113_p2), %vm200_vm3, 65537, %v674_v13  ;;  %vm189_vm7 = vmand (!%p113_p2), %vm187_vm4, %vm188_vm1  ;;  %v656_v24 = vld [vmem:[%s772_s1 + $0x40] sm:$0xff] (!%p113_p2)   ;;  %v661_v25 = vld [vmem:[%s772_s1 + $0x38] sm:$0xff] (!%p113_p2)   ;;  %vm364_vm12 = vcmask (!%p113_p2), 1047552   ;;  %vm365_vm13 = vsmask.f32 (!%p113_p2), 7424 }
   0x9   : > { %v149_v6 = vadd.s32 (!%p113_p2), 8, %v148_v4  ;;  %v154_v7 = vand.u32 (!%p113_p2), 15, %v148_v4  ;;  %597 = vmatpush3.bf16.msra.mxu1 (!%p113_p2), %v654_v5  ;;  %v658_v28 = vld [vmem:[%s772_s1 + $0x48] sm:$0xff] (!%p113_p2)   ;;  %v660_v31 = vld [vmem:[%s772_s1 + $0x50] sm:$0xff] (!%p113_p2)   ;;  %vm366_vm14 = vmand (!%p113_p2), %vm364_vm12, %vm365_vm13 }
   0xa   : > { %598 = vmatprep.subr.bf16.mxu1 (!%p113_p2), %v671_v2  ;;  %v662_v34 = vld [vmem:[%s772_s1 + $0x58] sm:$0xff] (!%p113_p2)  }
   0xb   : > { %611 = vmatpush3.bf16.msra.mxu0 (!%p113_p2), %v651_v3  ;;  %v161_v9 = vand.u32 (!%p113_p2), 15, %v149_v6  ;;  %v191_v10 = vadd.s32 (!%p113_p2), 4294967295, %v154_v7 }
   0xc   : > { %612 = vmatprep.subr.bf16.mxu0 (!%p113_p2), %v671_v2 }
   0xd   : > { %s775_s10 = smov (!%p133_p3, %s536_s10), 1  ;;  %vm193_vm5 = vcmp.ge.s32.totalorder %v191_v10, 0  ;;  %v369_v19 = vadd.s32 1, %v161_v9  ;;  %599 = vmatpush3.bf16.msra.mxu1 %v657_v15 }
   0xe   : > { %s580_s19 = sshll.u32 %s775_s10, 3  ;;  %vm199_vm6 = vmpackc.low %vm193_vm5, %vm193_vm5  ;;  %600 = vmatprep.subr.bf16.mxu1 %v671_v2  ;;  %s543_s13 = sshll.u32 %s775_s10, 1 }
   0xf   : > { %s137_s22 = scalar_lea.vmem %s771_s0, %s580_s19  ;;  %613 = vmatpush3.bf16.msra.mxu0 %v652_v8  ;;  %v201_v18 = vsel %vm199_vm6, 65537, %v674_v13  ;;  %vm371_vm10 = vcmp.lt.s32.totalorder %v369_v19, 16  ;;  %s141_s16 = scalar_lea.vmem %s773_s2, %s543_s13 }
  0x10   : > { %v655_v12 = vld [vmem:[%s137_s22] sm:$0xff]   ;;  %614 = vmatprep.subr.bf16.mxu0 %v671_v2  ;;  %v545_v21 = vcombine.low %v201_v18, %v202_v14  ;;  %vm377_vm11 = vmpackc.low %vm371_vm10, %vm371_vm10 }
  0x11   : > { %v180_v16 = vshrl.u32 %v655_v12, 16  ;;  %v183_v17 = vshll.u32 %v655_v12, 16  ;;  %601 = vmatpush3.bf16.msra.mxu1 %v659_v22  ;;  %v379_v30 = vsel %vm377_vm11, 65537, %v674_v13 }
  0x12   : > { %vm206_vm8 = vcmp.ne.s16.totalorder %v545_v21, 0  ;;  %602 = vmatprep.subr.bf16.mxu1 %v671_v2  ;;  %v564_v32 = vcombine.low %v202_v14, %v379_v30 }
  0x13   : > { %v182_v20 = vrot.slane %v180_v16, 7  ;;  %615 = vmatpush3.bf16.msra.mxu0 %v653_v11  ;;  %v361_v29 = vrot.slane %v183_v17, 1 }
  0x14   : > { %620 = vmatprep.subr.bf16.mxu0 %v671_v2  ;;  %vm383_vm15 = vcmp.ne.s16.totalorder %v564_v32, 0 }
  0x15   : > { %v185_v23 = vor.u32 %v183_v17, %v182_v20  ;;  %603 = vmatpush3.bf16.msra.mxu1 %v661_v25  ;;  %v362_v33 = vor.u32 %v361_v29, %v180_v16 }
  0x17   : > { %v190_v26 = vsel %vm189_vm7, 0, %v185_v23  ;;  %v367_v35 = vsel %vm366_vm14, %v362_v33, 0 }
  0x18   : > { %v207_v27 = vsel %vm206_vm8, %v190_v26, 0  ;;  %605 = vmatmul.mubr.msk.bf16.vlgmr.msra.gmra.mrb[0].mxu1 %vm249_vm9, %v655_v12  ;;  %v384_v36 = vsel %vm383_vm15, %v367_v35, 0 }
  0x19   : > { %617 = vmatmul.mubr.msk.bf16.vlgmr.msra.gmra.mrb[0].mxu0 %vm249_vm9, %v207_v27 }
  0x1a   : > { %621 = vmatpush3.bf16.msra.mxu0 %v656_v24  ;;  %628 = vmatprep.mubr.msk.bf16.mxu0 %vm672_vm0, %v671_v2 }
  0x1b   : > { %622 = vmatprep.subr.bf16.mxu0 %v671_v2 }
  0x1e   : > { %623 = vmatpush3.bf16.msra.mxu0 %v658_v28 }
  0x1f   : > { %624 = vmatprep.subr.bf16.mxu0 %v671_v2 }
  0x22   : > { %625 = vmatpush3.bf16.msra.mxu0 %v660_v31 }
  0x23   : > { %626 = vmatprep.subr.bf16.mxu0 %v671_v2 }
  0x26   : > { %627 = vmatpush3.bf16.msra.mxu0 %v662_v34 }
  0x29   : > { %629 = vmatmul.mubr.msk.bf16.vlgmr.msra.gmra.mrb[0].mxu0 %vm249_vm9, %v384_v36 }
  0xeb   : > { %v286_v37 = vpop.f32.mrb[0].mxu1 }
  0xec   : > { %v606_v38 = vpop.f32.mrb[1].mxu1 }
  0xed   : > { %v289_v39 = vpop.f32.mrb[2].mxu1 }
  0xee   : > { %v607_v40 = vpop.f32.mrb[3].mxu1 }
  0xfc   : > { %v455_v41 = vpop.f32.mrb[0].mxu0 }
  0xfd   : > { %v632_v42 = vadd.f32 %v455_v41, %v286_v37  ;;  %v630_v43 = vpop.f32.mrb[1].mxu0 }
  0xfe   : > { %v458_v44 = vpop.f32.mrb[2].mxu0 }
  0xff   : > { %v633_v45 = vadd.f32 %v458_v44, %v289_v39  ;;  %v631_v46 = vpop.f32.mrb[3].mxu0  ;;  %v471_v47 = vmul.f32 %v632_v42, %v632_v42 }
 0x101   : > { %v464_v48 = vadd.f32 %v633_v45, %v632_v42  ;;  %v472_v49 = vmul.f32 %v633_v45, %v633_v45 }
 0x103   : > { %v465_v50 = vrot.slane %v464_v48, 4  ;;  %v473_v51 = vadd.f32 %v472_v49, %v471_v47 }
 0x105   : > { %v466_v52 = vadd.f32 %v465_v50, %v464_v48  ;;  %v474_v53 = vrot.slane %v473_v51, 4 }
 0x107   : > { %v467_v54 = vrot.slane %v466_v52, 2  ;;  %v475_v55 = vadd.f32 %v474_v53, %v473_v51 }
 0x109   : > { %v468_v56 = vadd.f32 %v467_v54, %v466_v52  ;;  %v476_v57 = vrot.slane %v475_v55, 2 }
 0x10b   : > { %v469_v58 = vrot.slane %v468_v56, 1  ;;  %v477_v59 = vadd.f32 %v476_v57, %v475_v55 }
 0x10d   : > { %v478_v60 = vrot.slane %v477_v59, 1  ;;  %v470_v61 = vadd.f32 %v469_v58, %v468_v56 }
 0x10f   : > { %v479_v62 = vadd.f32 %v478_v60, %v477_v59 }
 0x111   : > { %v481_v63 = vsel %vm187_vm4, %v470_v61, %v479_v62 }
 0x112   : > { %482 = vst [vmem:[%s141_s16] sm:$0x3] %v481_v63 }
 0x113 PF: > { %s12_s9 = sadd.s32 1, %s669_s9  }
 0x114   : > { %p9_p4 = scmp.ge.s32.totalorder %s12_s9, 4  }
 0x116   :  { %11 = sbr.rel (!%p9_p4) target bundleno = 1 (0x1), region = 60 }

// kernel: _lambda_.3
= control target key start
LH: loop header
LB: loop body
LE: loop exit
PB: predicated region body
PF: predicated region fallthrough
CT: control target
= control target key end

     0   :  { %s765_s15 = smov 0   ;;  %s851_s0 = inlined_call_operand.vmem [shape: bf16[2,16,64], index: 0, kind: input, shape index: {}]   ;;  %s852_s1 = inlined_call_operand.vmem [shape: bf16[3,64,128], index: 1, kind: input, shape index: {}]   ;;  %s853_s2 = inlined_call_operand.vmem [shape: f32[1,128], index: 2, kind: input, shape index: {}]   ;;  %s854_s3 = inlined_call_operand.vmem [shape: f32[1,128], index: 3, kind: input, shape index: {}]   ;;  %s855_s4 = inlined_call_operand.vmem [shape: f32[2,16,128], index: 4, kind: output, shape index: {}]  }
   0x1 LB: > { %s597_s16 = sadd.s32 4294967295, %s734_s15   ;;  %p601_p0 = scmp.ge.s32.totalorder %s734_s15, 1  ;;  %s734_s15 = sphi %s765_s15, %s14_s15  }
   0x2   : > { %p162_p1 = scmp.lt.s32.totalorder %s734_s15, 3 }
   0x4   : > { %p163_p2 = pnand %p601_p0, %p162_p1 }
   0x5   : > { %v715_v0 = vld [vmem:[%s852_s1] sm:$0xff] (!%p163_p2)   ;;  %v203_v1 = vlaneseq (!%p163_p2)  ;;  %v736_v2 = vmov (!%p163_p2), 0.0   ;;  %v716_v3 = vld [vmem:[%s852_s1 + $0x8] sm:$0xff] (!%p163_p2)   ;;  %vm737_vm0 = vmmov (!%p163_p2), 0   ;;  %p188_p3 = scmp.lt.s32.totalorder (!%p163_p2), %s597_s16, 1  ;;  %v717_v8 = vld [vmem:[%s852_s1 + $0x10] sm:$0xff] (!%p163_p2)  }
   0x6   : > { %166 = sbr.rel (%p163_p2) target bundleno = 264 (0x108), region = 36  ;;  %673 = vmatprep.subr.bf16.mxu0 (!%p163_p2), %v736_v2  ;;  %661 = vmatprep.subr.bf16.mxu1 (!%p163_p2), %v736_v2  ;;  %v719_v5 = vld [vmem:[%s852_s1 + $0x20] sm:$0xff] (!%p163_p2)   ;;  %vm244_vm1 = vsmask.f32 (!%p163_p2), 256  ;;  %vm738_vm2 = vmmov (!%p163_p2), 1   ;;  %v718_v11 = vld [vmem:[%s852_s1 + $0x18] sm:$0xff] (!%p163_p2)  }
   0x7   : > { %674 = vmatpush3.bf16.msra.mxu0 (!%p163_p2), %v715_v0  ;;  %681 = vmatprep.mubr.msk.bf16.mxu0 (!%p163_p2), %vm737_vm0, %v736_v2  ;;  %v204_v4 = vshrl.u32 (!%p163_p2), %v203_v1, 7  ;;  %vm256_vm3 = vmpackc.low (!%p163_p2), %vm738_vm2, %vm738_vm2  ;;  %vm243_vm4 = vcmask (!%p163_p2), 1040384   ;;  %v739_v13 = vmov (!%p163_p2), 0   ;;  %v722_v15 = vld [vmem:[%s852_s1 + $0x28] sm:$0xff] (!%p163_p2)   ;;  %v724_v22 = vld [vmem:[%s852_s1 + $0x30] sm:$0xff] (!%p163_p2)   ;;  %vm305_vm9 = vcmask (!%p163_p2), 523264  }
   0x8   : > { %675 = vmatprep.subr.bf16.mxu0 (!%p163_p2), %v736_v2  ;;  %669 = vmatprep.mubr.msk.bf16.mxu1 (!%p163_p2), %vm737_vm0, %v736_v2  ;;  %v258_v14 = vsel (!%p163_p2), %vm256_vm3, 65537, %v739_v13  ;;  %vm245_vm7 = vmand (!%p163_p2), %vm243_vm4, %vm244_vm1  ;;  %v721_v24 = vld [vmem:[%s852_s1 + $0x40] sm:$0xff] (!%p163_p2)   ;;  %v726_v25 = vld [vmem:[%s852_s1 + $0x38] sm:$0xff] (!%p163_p2)   ;;  %vm420_vm12 = vcmask (!%p163_p2), 1047552   ;;  %vm421_vm13 = vsmask.f32 (!%p163_p2), 7424 }
   0x9   : > { %v205_v6 = vadd.s32 (!%p163_p2), 8, %v204_v4  ;;  %v210_v7 = vand.u32 (!%p163_p2), 15, %v204_v4  ;;  %662 = vmatpush3.bf16.msra.mxu1 (!%p163_p2), %v719_v5  ;;  %v723_v28 = vld [vmem:[%s852_s1 + $0x48] sm:$0xff] (!%p163_p2)   ;;  %v725_v31 = vld [vmem:[%s852_s1 + $0x50] sm:$0xff] (!%p163_p2)   ;;  %vm422_vm14 = vmand (!%p163_p2), %vm420_vm12, %vm421_vm13 }
   0xa   : > { %663 = vmatprep.subr.bf16.mxu1 (!%p163_p2), %v736_v2  ;;  %v727_v34 = vld [vmem:[%s852_s1 + $0x58] sm:$0xff] (!%p163_p2)   ;;  %v640_v42 = vld [vmem:[%s853_s2] ss:$0 sm:$0xff] (!%p163_p2) }
   0xb   : > { %676 = vmatpush3.bf16.msra.mxu0 (!%p163_p2), %v716_v3  ;;  %v217_v9 = vand.u32 (!%p163_p2), 15, %v205_v6  ;;  %v247_v10 = vadd.s32 (!%p163_p2), 4294967295, %v210_v7  ;;  %v641_v45 = vld [vmem:[%s854_s3] ss:$0 sm:$0xff] (!%p163_p2) }
   0xc   : > { %677 = vmatprep.subr.bf16.mxu0 (!%p163_p2), %v736_v2 }
   0xd   : > { %s857_s16 = smov (!%p188_p3, %s597_s16), 1  ;;  %vm249_vm5 = vcmp.ge.s32.totalorder %v247_v10, 0  ;;  %v425_v19 = vadd.s32 1, %v217_v9  ;;  %664 = vmatpush3.bf16.msra.mxu1 %v722_v15 }
   0xe   : > { %s644_s25 = sshll.u32 %s857_s16, 3  ;;  %vm255_vm6 = vmpackc.low %vm249_vm5, %vm249_vm5  ;;  %665 = vmatprep.subr.bf16.mxu1 %v736_v2 }
   0xf   : > { %s192_s28 = scalar_lea.vmem %s851_s0, %s644_s25  ;;  %678 = vmatpush3.bf16.msra.mxu0 %v717_v8  ;;  %v257_v18 = vsel %vm255_vm6, 65537, %v739_v13  ;;  %vm427_vm10 = vcmp.lt.s32.totalorder %v425_v19, 16  ;;  %s645_s25 = sshll.u32 %s857_s16, 4 }
  0x10   : > { %v720_v12 = vld [vmem:[%s192_s28] sm:$0xff]   ;;  %679 = vmatprep.subr.bf16.mxu0 %v736_v2  ;;  %v607_v21 = vcombine.low %v257_v18, %v258_v14  ;;  %vm433_vm11 = vmpackc.low %vm427_vm10, %vm427_vm10  ;;  %s197_s28 = scalar_lea.vmem %s855_s4, %s645_s25 }
  0x11   : > { %v236_v16 = vshrl.u32 %v720_v12, 16  ;;  %v239_v17 = vshll.u32 %v720_v12, 16  ;;  %666 = vmatpush3.bf16.msra.mxu1 %v724_v22  ;;  %v435_v30 = vsel %vm433_vm11, 65537, %v739_v13 }
  0x12   : > { %vm262_vm8 = vcmp.ne.s16.totalorder %v607_v21, 0  ;;  %667 = vmatprep.subr.bf16.mxu1 %v736_v2  ;;  %v626_v32 = vcombine.low %v258_v14, %v435_v30 }
  0x13   : > { %v238_v20 = vrot.slane %v236_v16, 7  ;;  %680 = vmatpush3.bf16.msra.mxu0 %v718_v11  ;;  %v417_v29 = vrot.slane %v239_v17, 1 }
  0x14   : > { %685 = vmatprep.subr.bf16.mxu0 %v736_v2  ;;  %vm439_vm15 = vcmp.ne.s16.totalorder %v626_v32, 0 }
  0x15   : > { %v241_v23 = vor.u32 %v239_v17, %v238_v20  ;;  %668 = vmatpush3.bf16.msra.mxu1 %v726_v25  ;;  %v418_v33 = vor.u32 %v417_v29, %v236_v16 }
  0x17   : > { %v246_v26 = vsel %vm245_vm7, 0, %v241_v23  ;;  %v423_v35 = vsel %vm422_vm14, %v418_v33, 0 }
  0x18   : > { %v263_v27 = vsel %vm262_vm8, %v246_v26, 0  ;;  %670 = vmatmul.mubr.msk.bf16.vlgmr.msra.gmra.mrb[0].mxu1 %vm305_vm9, %v720_v12  ;;  %v440_v36 = vsel %vm439_vm15, %v423_v35, 0 }
  0x19   : > { %682 = vmatmul.mubr.msk.bf16.vlgmr.msra.gmra.mrb[0].mxu0 %vm305_vm9, %v263_v27 }
  0x1a   : > { %686 = vmatpush3.bf16.msra.mxu0 %v721_v24  ;;  %693 = vmatprep.mubr.msk.bf16.mxu0 %vm737_vm0, %v736_v2 }
  0x1b   : > { %687 = vmatprep.subr.bf16.mxu0 %v736_v2 }
  0x1e   : > { %688 = vmatpush3.bf16.msra.mxu0 %v723_v28 }
  0x1f   : > { %689 = vmatprep.subr.bf16.mxu0 %v736_v2 }
  0x22   : > { %690 = vmatpush3.bf16.msra.mxu0 %v725_v31 }
  0x23   : > { %691 = vmatprep.subr.bf16.mxu0 %v736_v2 }
  0x26   : > { %692 = vmatpush3.bf16.msra.mxu0 %v727_v34 }
  0x29   : > { %694 = vmatmul.mubr.msk.bf16.vlgmr.msra.gmra.mrb[0].mxu0 %vm305_vm9, %v440_v36 }
  0xeb   : > { %v342_v37 = vpop.f32.mrb[0].mxu1 }
  0xec   : > { %v671_v38 = vpop.f32.mrb[1].mxu1 }
  0xed   : > { %v345_v39 = vpop.f32.mrb[2].mxu1 }
  0xee   : > { %v672_v40 = vpop.f32.mrb[3].mxu1 }
  0xfc   : > { %v511_v41 = vpop.f32.mrb[0].mxu0 }
  0xfd   : > { %v697_v43 = vadd.f32 %v511_v41, %v342_v37  ;;  %v695_v44 = vpop.f32.mrb[1].mxu0 }
  0xfe   : > { %v514_v46 = vpop.f32.mrb[2].mxu0 }
  0xff   : > { %v527_v47 = vmul.f32 %v697_v43, %v640_v42  ;;  %v698_v48 = vadd.f32 %v514_v46, %v345_v39  ;;  %v696_v49 = vpop.f32.mrb[3].mxu0 }
 0x101   : > { %v536_v50 = vadd.f32 %v641_v45, %v527_v47  ;;  %v528_v51 = vmul.f32 %v698_v48, %v640_v42 }
 0x103   : > { %v538_v52 = vmax.f32 %v536_v50, 0.0  ;;  %v537_v53 = vadd.f32 %v641_v45, %v528_v51 }
 0x105   : > { %540 = vst [vmem:[%s197_s28] sm:$0xff] %v538_v52  ;;  %v539_v54 = vmax.f32 %v537_v53, 0.0 }
 0x107   : > { %541 = vst [vmem:[%s197_s28 + $0x8] sm:$0xff] %v539_v54 }
 0x108 PF: > { %s14_s15 = sadd.s32 1, %s734_s15  }
 0x109   : > { %p11_p4 = scmp.ge.s32.totalorder %s14_s15, 4  }
 0x10b   :  { %13 = sbr.rel (!%p11_p4) target bundleno = 1 (0x1), region = 68 }

</bundles_post_ra>
